<compile_context>
chip_gen: v7x
topology: tpu7x:2x2x1
jax: 0.10.0
libtpu: 0.0.40
codegen_flags: <defaults>
</compile_context>

<pallas_src>
import jax
import jax.numpy as jnp
from jax import lax
from jax.experimental import pallas as pl
from jax.experimental.pallas import tpu as pltpu


# ----------------------------------------------------------------------------
# Kernels
# ----------------------------------------------------------------------------

def _se_kernel(x_ref, w1_ref, w2_ref, o_ref):
    """Single-pass SE: pool -> FC -> ReLU -> FC -> sigmoid -> scale.

    x_ref : (BB, C, HW)  native dtype (one HBM read, one HBM write)
    w1_ref: (C_red, C)   f32, lane axis = C   (== fc[0].weight)
    w2_ref: (C_red, C)   f32, lane axis = C   (== fc[2].weight.T)
    """
    x = x_ref[...]
    inv_hw = jnp.float32(1.0 / x_ref.shape[-1])
    pooled = jnp.sum(x, axis=-1, dtype=jnp.float32) * inv_hw          # (BB, C) f32

    h1 = lax.dot_general(pooled, w1_ref[...], (((1,), (1,)), ((), ())),
                         preferred_element_type=jnp.float32)           # (BB, C_red)
    h1 = jnp.maximum(h1, 0.0)
    h2 = jnp.dot(h1, w2_ref[...], preferred_element_type=jnp.float32)  # (BB, C)
    gate = jax.nn.sigmoid(h2).astype(x.dtype)                          # (BB, C)

    o_ref[...] = x * gate[:, :, None]


def _se_scale_kernel(x_ref, gate_ref, o_ref):
    """Two-pass fallback, pass 2: elementwise x * gate over an HW grid axis.

    x_ref: (1, C, THW); gate_ref: (1, C, 1) already in x.dtype.
    """
    o_ref[...] = x_ref[...] * gate_ref[...]


# ----------------------------------------------------------------------------
# Chip-dependent knobs (conservative, guarded lookups)
# ----------------------------------------------------------------------------

def _vmem_budgets():
    """(per-step block budget bytes, vmem_limit_bytes) gated on physical VMEM."""
    try:
        phys = int(pltpu.get_tpu_info().vmem_capacity_bytes)
    except Exception:
        phys = 64 << 20                       # assume the smallest (v7x per-TC)
    if phys >= (100 << 20):                   # 128 MiB parts: v5e / v6e
        return 56 << 20, 100 << 20
    return 28 << 20, 48 << 20                 # 64 MiB parts: v7x


def _batch_dim_semantics(num_steps, core_parallel):
    """Semantics for the batch grid axis.

    On v7x (2 TensorCores/chip) CORE_PARALLEL is what actually shards a grid
    axis across TensorCores; single-TC v5e/v6e keep "parallel".  Auto-detection
    is conservative; v7x callers can force it with core_parallel=True.
    """
    if core_parallel is None:
        try:
            info = pltpu.get_tpu_info()
            core_parallel = int(getattr(info, "num_cores", 1) or 1) > 1
        except Exception:
            core_parallel = False
    if core_parallel and num_steps >= 2:
        return (pltpu.CORE_PARALLEL,)
    return ("parallel",)


# ----------------------------------------------------------------------------
# Wrappers
# ----------------------------------------------------------------------------

def _se_two_pass(x, fc0_weight, fc2_weight, *, block_budget, vmem_limit):
    """Fallback when one (C, HW) image block exceeds the VMEM budget.

    Pass 1 (XLA): global average pool + tiny FC stack -> per-(b, c) gate.
    Pass 2 (Pallas): x * gate, tiled over an HW grid axis with lane-dense blocks.
    Costs one extra HBM read of x vs. the single-pass kernel.
    """
    b, c, h, w = x.shape
    hw = h * w
    itemsize = jnp.dtype(x.dtype).itemsize

    pooled = jnp.mean(x, axis=(2, 3), dtype=jnp.float32)                 # (B, C)
    h1 = jnp.maximum(pooled @ fc0_weight.astype(jnp.float32).T, 0.0)     # (B, C_red)
    gate = jax.nn.sigmoid(h1 @ fc2_weight.astype(jnp.float32).T)         # (B, C)
    gate = gate.astype(x.dtype).reshape(b, c, 1)

    # Lane-dense HW tile sized against the budget (in+out double-buffered).
    row_bytes = c * itemsize
    thw_cap = max(1, block_budget // (4 * row_bytes))
    if hw <= 128 or thw_cap >= hw:
        thw = hw
    else:
        # TODO(synk): if even (1, C, 128) overflows (enormous C), split C too.
        thw = max(128, (min(thw_cap, hw) // 128) * 128)
    grid = (b, pl.cdiv(hw, thw))

    cost = pl.CostEstimate(
        flops=b * c * hw,
        transcendentals=0,
        bytes_accessed=2 * b * c * hw * itemsize + b * c * itemsize,
    )
    params = pltpu.CompilerParams(
        dimension_semantics=("parallel", "parallel"),
        vmem_limit_bytes=vmem_limit,
    )

    x_k = x.reshape(b, c, hw)
    out = pl.pallas_call(
        _se_scale_kernel,
        out_shape=jax.ShapeDtypeStruct((b, c, hw), x.dtype),
        grid=grid,
        in_specs=[
            pl.BlockSpec((1, c, thw), lambda i, j: (i, 0, j)),
            pl.BlockSpec((1, c, 1), lambda i, j: (i, 0, 0)),
        ],
        out_specs=pl.BlockSpec((1, c, thw), lambda i, j: (i, 0, j)),
        compiler_params=params,
        cost_estimate=cost,
    )(x_k, gate)
    return out.reshape(b, c, h, w)


def se_module(x, fc0_weight, fc2_weight, *, donate_x=False, core_parallel=None,
              force_two_pass=False):
    """Squeeze-and-Excitation forward.

    x          : (B, C, H, W)  NCHW, like the PyTorch module.
    fc0_weight : (C//r, C)     == SEModule.fc[0].weight  (no bias)
    fc2_weight : (C, C//r)     == SEModule.fc[2].weight  (no bias)
    donate_x   : alias x to the output (input_output_aliases={0: 0}).
    Returns (B, C, H, W).
    """
    b, c, h, w = x.shape
    hw = h * w
    c_red = fc0_weight.shape[0]
    assert fc0_weight.shape == (c_red, c)
    assert fc2_weight.shape == (c, c_red)

    block_budget, vmem_limit = _vmem_budgets()
    itemsize = jnp.dtype(x.dtype).itemsize
    per_image_bytes = c * hw * itemsize

    # Oversized-image escape hatch (e.g. v7x's 64 MiB VMEM): two-pass path.
    if force_two_pass or 4 * per_image_bytes > block_budget:
        return _se_two_pass(x, fc0_weight, fc2_weight,
                            block_budget=block_budget, vmem_limit=vmem_limit)

    # --- batch blocking: ~8 grid steps when B permits, blocks >= ~1 MiB ------
    bb_budget = max(1, block_budget // (4 * per_image_bytes))
    bb = pl.cdiv(b, min(b, 8))                      # aim for ~8 grid steps
    min_block_bb = pl.cdiv(1 << 20, per_image_bytes)
    if bb < min_block_bb:
        # Tiny images: trade steps for block size, but keep >= 2 steps.
        bb = min(min_block_bb, max(1, pl.cdiv(b, 2)))
    bb = max(1, min(bb, bb_budget, b))
    grid = (pl.cdiv(b, bb),)

    # Weights cast to f32 once here (constant index_map -> never re-DMA'd,
    # no per-grid-step VPU cast in the kernel).  Lane axis = C for both.
    w1 = fc0_weight.astype(jnp.float32)             # (C_red, C)
    w2 = fc2_weight.T.astype(jnp.float32)           # (C_red, C)

    cost = pl.CostEstimate(
        flops=4 * b * c * c_red + 2 * b * c * hw,
        transcendentals=b * c,
        bytes_accessed=2 * b * c * hw * itemsize + 2 * 4 * c * c_red,
    )
    params = pltpu.CompilerParams(
        dimension_semantics=_batch_dim_semantics(grid[0], core_parallel),
        vmem_limit_bytes=vmem_limit,
    )

    x_k = x.reshape(b, c, hw)                       # free: NCHW is contiguous
    out = pl.pallas_call(
        _se_kernel,
        out_shape=jax.ShapeDtypeStruct((b, c, hw), x.dtype),
        grid=grid,
        in_specs=[
            pl.BlockSpec((bb, c, hw), lambda i: (i, 0, 0)),
            # TODO(synk): pipeline_mode=pl.Buffered(1) on the weight specs would
            # drop their (tiny) double buffers.
            pl.BlockSpec((c_red, c), lambda i: (0, 0)),
            pl.BlockSpec((c_red, c), lambda i: (0, 0)),
        ],
        out_specs=pl.BlockSpec((bb, c, hw), lambda i: (i, 0, 0)),
        compiler_params=params,
        cost_estimate=cost,
        input_output_aliases={0: 0} if donate_x else {},
    )(x_k, w1, w2)
    return out.reshape(b, c, h, w)


def se_reference(x, fc0_weight, fc2_weight):
    """Pure-JAX reference mirroring the PyTorch forward."""
    y = jnp.mean(x, axis=(2, 3))                    # avg_pool(1).view(b, c)
    y = jnp.maximum(y @ fc0_weight.T, 0.0)          # Linear + ReLU
    y = jax.nn.sigmoid(y @ fc2_weight.T)            # Linear + Sigmoid
    return x * y[:, :, None, None]


if __name__ == "__main__":
    # SEModule(channels=32, reduction=16) -> hidden = 2
    B, C, H, W = 2, 32, 16, 16
    REDUCTION = 16
    C_RED = C // REDUCTION

    key = jax.random.PRNGKey(0)
    kx, k1, k2 = jax.random.split(key, 3)
    x = jax.random.normal(kx, (B, C, H, W), dtype=jnp.float32)
    # PyTorch-layout Linear weights (no bias).
    fc0_w = jax.random.normal(k1, (C_RED, C), dtype=jnp.float32) * 0.2
    fc2_w = jax.random.normal(k2, (C, C_RED), dtype=jnp.float32) * 0.2

    ref = jax.block_until_ready(se_reference(x, fc0_w, fc2_w))

    # Primary single-pass kernel.
    out = jax.block_until_ready(se_module(x, fc0_w, fc2_w))
    assert out.shape == (B, C, H, W)
    assert jnp.allclose(out, ref, atol=1e-5, rtol=1e-5), "single-pass mismatch"

    # Two-pass fallback path (oversized-image escape hatch) also exercised.
    out2 = jax.block_until_ready(se_module(x, fc0_w, fc2_w, force_two_pass=True))
    assert jnp.allclose(out2, ref, atol=1e-5, rtol=1e-5), "two-pass mismatch"

    print("KERNEL_OK")
</pallas_src>

<mosaic_0001>
module attributes {stable_mosaic.version = 11 : i64} {
  func.func @_se_kernel(%arg0: i32, %arg1: memref<1x32x256xf32, #tpu.memory_space<vmem>>, %arg2: memref<2x32xf32, #tpu.memory_space<vmem>>, %arg3: memref<2x32xf32, #tpu.memory_space<vmem>>, %arg4: memref<1x32x256xf32, #tpu.memory_space<vmem>>) attributes {dimension_semantics = [#tpu.dimension_semantics<parallel>], iteration_bounds = array<i64: 2>, scalar_prefetch = 0 : i64, scratch_operands = 0 : i64, tpu.core_type = #tpu.core_type<tc>, window_params = [{transform_indices = @transform_0, window_bounds = array<i64: 1, 32, 256>}, {pipeline_mode = #tpu.pipeline_mode<synchronous>, transform_indices = @transform_1, window_bounds = array<i64: 2, 32>}, {pipeline_mode = #tpu.pipeline_mode<synchronous>, transform_indices = @transform_2, window_bounds = array<i64: 2, 32>}, {transform_indices = @transform_3, window_bounds = array<i64: 1, 32, 256>}]} {
    %c0 = arith.constant 0 : index
    %c0_0 = arith.constant 0 : index
    %c0_1 = arith.constant 0 : index
    %0 = vector.load %arg1[%c0, %c0_0, %c0_1] : memref<1x32x256xf32, #tpu.memory_space<vmem>>, vector<1x32x256xf32>
    %cst = arith.constant dense<0.000000e+00> : vector<1x32xf32>
    %1 = vector.multi_reduction <add>, %0, %cst [2] : vector<1x32x256xf32> to vector<1x32xf32>
    %cst_2 = arith.constant 3.906250e-03 : f32
    %2 = vector.broadcast %cst_2 : f32 to vector<1x32xf32>
    %3 = arith.mulf %1, %2 : vector<1x32xf32>
    %c0_3 = arith.constant 0 : index
    %c0_4 = arith.constant 0 : index
    %4 = vector.load %arg2[%c0_3, %c0_4] : memref<2x32xf32, #tpu.memory_space<vmem>>, vector<2x32xf32>
    %cst_5 = arith.constant dense<0.000000e+00> : vector<1x2xf32>
    %5 = tpu.matmul %3, %4, %cst_5 {dimension_numbers = #tpu.dot_dimension_numbers<[1], [1], [0], [0], [0, 0, 1, 0], [], []>} : vector<1x32xf32>, vector<2x32xf32>, vector<1x2xf32> -> vector<1x2xf32>
    %cst_6 = arith.constant 0.000000e+00 : f32
    %6 = vector.broadcast %cst_6 : f32 to vector<1x2xf32>
    %7 = arith.maximumf %5, %6 : vector<1x2xf32>
    %c0_7 = arith.constant 0 : index
    %c0_8 = arith.constant 0 : index
    %8 = vector.load %arg3[%c0_7, %c0_8] : memref<2x32xf32, #tpu.memory_space<vmem>>, vector<2x32xf32>
    %cst_9 = arith.constant dense<0.000000e+00> : vector<1x32xf32>
    %9 = tpu.matmul %7, %8, %cst_9 {dimension_numbers = #tpu.dot_dimension_numbers<[1], [0], [0], [1], [0, 0, 1, 1], [], []>} : vector<1x2xf32>, vector<2x32xf32>, vector<1x32xf32> -> vector<1x32xf32>
    %10 = arith.negf %9 : vector<1x32xf32>
    %11 = math.exp %10 : vector<1x32xf32>
    %cst_10 = arith.constant 1.000000e+00 : f32
    %12 = vector.broadcast %cst_10 : f32 to vector<1x32xf32>
    %13 = arith.addf %12, %11 : vector<1x32xf32>
    %14 = arith.divf %12, %13 : vector<1x32xf32>
    %15 = vector.shape_cast %14 : vector<1x32xf32> to vector<1x32x1xf32>
    %16 = vector.broadcast %15 : vector<1x32x1xf32> to vector<1x32x256xf32>
    %17 = arith.mulf %0, %16 : vector<1x32x256xf32>
    %c0_11 = arith.constant 0 : index
    %c0_12 = arith.constant 0 : index
    %c0_13 = arith.constant 0 : index
    %18 = vector.load %arg4[%c0_11, %c0_12, %c0_13] : memref<1x32x256xf32, #tpu.memory_space<vmem>>, vector<1x32x256xf32>
    tpu.vector_store %arg4[%c0_11, %c0_12, %c0_13], %17 {strides = array<i32>} : memref<1x32x256xf32, #tpu.memory_space<vmem>>, vector<1x32x256xf32>,
    return
  }
  func.func @transform_0(%arg0: i32) -> (i32, i32, i32) {
    %c0_i32 = arith.constant 0 : i32
    %c0_i32_0 = arith.constant 0 : i32
    %c0_i32_1 = arith.constant 0 : i32
    return %arg0, %c0_i32, %c0_i32_0 : i32, i32, i32
  }
  func.func @transform_1(%arg0: i32) -> (i32, i32) {
    %c0_i32 = arith.constant 0 : i32
    %c0_i32_0 = arith.constant 0 : i32
    %c0_i32_1 = arith.constant 0 : i32
    return %c0_i32, %c0_i32_0 : i32, i32
  }
  func.func @transform_2(%arg0: i32) -> (i32, i32) {
    %c0_i32 = arith.constant 0 : i32
    %c0_i32_0 = arith.constant 0 : i32
    %c0_i32_1 = arith.constant 0 : i32
    return %c0_i32, %c0_i32_0 : i32, i32
  }
  func.func @transform_3(%arg0: i32) -> (i32, i32, i32) {
    %c0_i32 = arith.constant 0 : i32
    %c0_i32_0 = arith.constant 0 : i32
    %c0_i32_1 = arith.constant 0 : i32
    return %arg0, %c0_i32, %c0_i32_0 : i32, i32, i32
  }
}

</mosaic_0001>

<bundles_post_ra>
// kernel: tpu_custom_call.1
= control target key start
LH: loop header
LB: loop body
LE: loop exit
PB: predicated region body
PF: predicated region fallthrough
CT: control target
= control target key end

     0   :  { %8 = vsyncpa [#allocation3], 0  ;;  %s952_s0 = inlined_call_operand.hbm [shape: f32[2,32,256], index: 0, kind: input, shape index: {}]   ;;  %s953_s1 = inlined_call_operand.vmem [shape: f32[2,32], index: 1, kind: input, shape index: {}]   ;;  %s954_s2 = inlined_call_operand.vmem [shape: f32[2,32], index: 2, kind: input, shape index: {}]   ;;  %s955_s3 = inlined_call_operand.hbm [shape: f32[2,32,256], index: 3, kind: output, shape index: {}]  }
   0x1   :  { %10 = vsyncpa [#allocation3 + $0x1], 0 }
   0x2   :  { %11 = vsyncpa [#allocation4], 0 }
   0x3   :  { %13 = vsyncpa [#allocation4 + $0x1], 0  ;;  %s746_s12 = smov 0   ;;  %s748_s13 = smov 0  }
   0x4   :  { %s750_s14 = smov 0   ;;  %s752_s15 = smov 0  }
   0x5 LB: > { %s767_s16 = sadd.s32 4294967295, %s716_s15   ;;  %s529_s17 = sadd.s32 4294967294, %s716_s15   ;;  %s716_s15 = sphi %s752_s15, %s968_s15   ;;  %s712_s14 = sphi %s750_s14, %s967_s14   ;;  %s708_s13 = sphi %s748_s13, %s966_s13   ;;  %s704_s12 = sphi %s746_s12, %s965_s12  }
   0x6   : > { %s771_s18 = sadd.s32 1, %s716_s15   ;;  %s26_s19 = sadd.s32 1, %s712_s14 }
   0x7   : > { %s23_s20 = ssub.s32 %s716_s15, %s771_s18  ;;  %p33_p0 = scmp.ne.s32.totalorder %s712_s14, %s708_s13 }
   0x8   : > { %p24_p1 = scmp.eq.s32.totalorder %s23_s20, 0  ;;  %p34_p2 = scmp.eq.s32.totalorder %s716_s15, 0 }
   0x9   : > { %p39_p3 = scmp.ne.s32.totalorder %s708_s13, %s704_s12  ;;  %p40_p4 = scmp.eq.s32.totalorder %s767_s16, 0 }
   0xa   : > { %s783_s21 = scalar_select %p24_p1, %s712_s14, %s26_s19  }
   0xb   : > { %p785_p5 = por %p34_p2, %p33_p0  ;;  %p789_p6 = por %p40_p4, %p39_p3 }
   0xc   : > { %p105_p7 = scmp.eq.s32.totalorder %s767_s16, 1  ;;  %p111_p8 = scmp.eq.s32.totalorder %s529_s17, 1 }
   0xd   : > { %p576_p10 = scmp.lt.s32.totalorder %s716_s15, 2  ;;  %s137_s26 = sand.u32 1, %s712_s14  }
   0xe   : > { %p796_p11 = por %p105_p7, %p33_p0  ;;  %p800_p12 = por %p111_p8, %p39_p3 }
   0xf   : > { %s548_s27 = sshll.u32 %s716_s15, 10  ;;  %s532_s28 = sshll.u32 %s137_s26, 6 }
  0x10   : > { %s959_s24 = scalar_select %p796_p11, 1, 0 }
  0x11   : > { %s960_s25 = scalar_select %p800_p12, 1, 0 }
  0x12   : > { %s809_s4 = scalar_lea.hbm %s952_s0, %s548_s27  ;;  %s141_s5 = scalar_lea.vmem [#allocation2], %s532_s28 }
  0x13   : > { %s148_s6 = sshll.u32 %s141_s5, 4  ;;  %p813_p13 = pnand %p576_p10, %p785_p5  ;;  %s817_s6 = int_to_ptr.vmem [resolvable:$true] %s148_s6 }
  0x14   : > { %s819_s8 = scalar_lea.sflag [#allocation3], %s137_s26  ;;  %s620_s9 = scalar_lea.hbm %s809_s4, 1024 }
  0x15   : > { %p621_p0 = scmp.ne.s32.totalorder %s809_s4, %s620_s9  ;;  %p622_p1 = pneg %p813_p13 }
  0x16   : > { %s625_s17 = scalar_lea.hbm %s952_s0, 2048  ;;  %p626_p4 = scmp.lt.u32.totalorder %s809_s4, %s952_s0 }
  0x17   : > { %p623_p2 = pnand %p622_p1, %p621_p0  ;;  %p627_p5 = scmp.lt.u32.totalorder %s625_s17, %s620_s9 }
  0x18   : > { %p629_p8 = scmp.lt.u32.totalorder %s620_s9, %s809_s4 }
  0x19   : > { %p624_p3 = pneg %p623_p2  ;;  %p628_p7 = por %p627_p5, %p626_p4 }
  0x1b   : > { %p630_p10 = por %p629_p8, %p628_p7 }
  0x1d   : > { %p631_p9 = pnand %p630_p10, %p624_p3 }
  0x1f   : > { %634 = shalt.err (!%p631_p9)
}
  0x20   : > { %s635_s22 = scalar_lea.vmem %s817_s6, 1024  ;;  %s718_s26 = smov [#allocation2]  }
  0x21   : > { %p636_p0 = scmp.ne.s32.totalorder %s817_s6, %s635_s22  ;;  %s640_s27 = sshll.u32 %s718_s26, 4  ;;  %s641_s27 = int_to_ptr.vmem [resolvable:$false] %s640_s27 }
  0x22   : > { %s642_s28 = scalar_lea.vmem %s641_s27, 2048  ;;  %p643_p11 = scmp.lt.s32.totalorder %s817_s6, %s641_s27 }
  0x23   : > { %p638_p2 = pnand %p636_p0, %p622_p1  ;;  %p644_p4 = scmp.lt.s32.totalorder %s642_s28, %s635_s22 }
  0x25   : > { %p639_p12 = pneg %p638_p2  ;;  %p645_p5 = por %p644_p4, %p643_p11 }
  0x27   : > { %p646_p7 = pnand %p645_p5, %p639_p12 }
  0x29   : > { %649 = shalt.err (!%p646_p7)
}
  0x2a   : > { %s719_s29 = smov 256   ;;  %s720_s30 = smov 16  }
  0x2b   : > { %571 = dma.hbm_to_vmem [thread:$0]  (!%p813_p13), %s809_s4, 1024, %s817_s6, %s819_s8, %s719_s29, %s719_s29, %s720_s30  }
  0x2c   : > { %p535_p9 = scmp.ge.s32.totalorder %s716_s15, 1  ;;  %p156_p1 = scmp.lt.s32.totalorder %s716_s15, 3 }
  0x2e   : > { %p157_p3 = pnand %p535_p9, %p156_p1 }
  0x2f   : > { %s850_s5 = sand.u32 (!%p157_p3), 1, %s708_s13  }
  0x30   : > { %160 = sbr.rel (%p157_p3) target bundleno = 806 (0x326), region = 32  ;;  %s536_s9 = sshll.u32 (!%p157_p3), %s850_s5, 6 }
  0x31   : > { %s163_s10 = scalar_lea.sflag (!%p157_p3), [#allocation3], %s850_s5  ;;  %s166_s11 = scalar_lea.vmem (!%p157_p3), [#allocation2], %s536_s9 }
  0x37   : > { %695 = dma.done.wait (%p789_p6), %s163_s10, 1024  }
  0x38   : > { %697 = vsyncadd (%p789_p6), %s163_s10, 4294966272  ;;  %v860_v0 = vld [vmem:[%s166_s11] sm:$0xff]  ;;  %v862_v1 = vld [vmem:[%s166_s11 + $0x8] sm:$0xff]  ;;  %v721_v12 = vmov 0.0   ;;  %vm245_vm0 = vcmask 261120   ;;  %vm722_vm1 = vmmov 0   ;;  %v218_v14 = vlaneseq }
  0x39   : > { %v864_v2 = vld [vmem:[%s166_s11 + $0x20] sm:$0xff]  ;;  %v197_v3 = vadd.f32 %v862_v1, %v860_v0  ;;  %v868_v4 = vld [vmem:[%s166_s11 + $0x28] sm:$0xff]  ;;  %v870_v5 = vld [vmem:[%s166_s11 + $0x10] sm:$0xff]  ;;  %554 = vmatprep.subr.mxu0 %v721_v12  ;;  %559 = vmatprep.subr.mxu1 %v721_v12  ;;  %vm229_vm2 = vcmask 130112   ;;  %vm236_vm3 = vcmask 195712   ;;  %vm243_vm4 = vcmask 261312  }
  0x3a   : > { %v872_v6 = vld [vmem:[%s166_s11 + $0x18] sm:$0xff]  ;;  %v203_v7 = vadd.f32 %v868_v4, %v864_v2  ;;  %v876_v8 = vld [vmem:[%s166_s11 + $0x30] sm:$0xff]  ;;  %v213_v13 = vld [vmem:[%s953_s1] sm:$0x3]  ;;  %556 = vmatprep.mubr.msk.f32.mxu0 %vm722_vm1, %v721_v12  ;;  %561 = vmatprep.mubr.msk.f32.mxu1 %vm722_vm1, %v721_v12  ;;  %v219_v15 = vand.u32 127, %v218_v14  ;;  %v221_v16 = vshrl.u32 %v218_v14, 7 }
  0x3b   : > { %v878_v9 = vld [vmem:[%s166_s11 + $0x38] sm:$0xff]  ;;  %198 = vadd.xlane.f32.xlu0 %v197_v3  ;;  %v200_v10 = vadd.f32 %v872_v6, %v870_v5  ;;  %555 = vmatpush3.xpose.msk.msra.mxu0 %vm245_vm0, %v213_v13  ;;  %v322_v39 = vld [vmem:[%s954_s2] sm:$0x3]  ;;  %vm327_vm5 = vcmask 1041408   ;;  %vm323_vm6 = vcmask 15360   ;;  %s188_s8 = scalar_lea.vmem [#allocation5], %s536_s9 }
  0x3c   : > { %204 = vadd.xlane.f32.xlu1 %v203_v7  ;;  %v206_v11 = vadd.f32 %v878_v9, %v876_v8  ;;  %v224_v17 = vadd.s32 4294967288, %v219_v15  ;;  %v231_v19 = vadd.s32 4294967280, %v219_v15  ;;  %v238_v20 = vadd.s32 4294967272, %v219_v15  ;;  %560 = vmatpush3.msk.msra.mxu1 %vm327_vm5, %v322_v39  ;;  %s456_s17 = sshll.u32 %s188_s8, 4  ;;  %s549_s19 = sshll.u32 %s767_s16, 10  ;;  %s901_s17 = int_to_ptr.vmem [resolvable:$true] %s456_s17 }
  0x3d   : > { %v222_v22 = vsub.s32 %v219_v15, %v221_v16  ;;  %v409_v48 = vsub.s32 0, %v221_v16  ;;  %s906_s26 = scalar_lea.hbm %s955_s3, %s549_s19  ;;  %s443_s16 = scalar_lea.sflag [#allocation4], %s850_s5 }
  0x3e   : > { %v227_v24 = vsub.s32 %v224_v17, %v221_v16  ;;  %v234_v25 = vsub.s32 %v231_v19, %v221_v16  ;;  %v241_v28 = vsub.s32 %v238_v20, %v221_v16  ;;  %s650_s27 = scalar_lea.vmem %s901_s17, 1024  ;;  %p962_p11 = scmp.ne.s32.totalorder %s959_s24, 0 }
  0x3f   : > { %201 = vadd.xlane.f32.xlu0 %v200_v10  ;;  %p651_p6 = scmp.ne.s32.totalorder %s901_s17, %s650_s27  ;;  %s723_s28 = smov [#allocation5]  }
  0x40   : > { %207 = vadd.xlane.f32.xlu1 %v206_v11  ;;  %s654_s29 = sshll.u32 %s723_s28, 4  ;;  %s655_s29 = int_to_ptr.vmem [resolvable:$false] %s654_s29 }
  0x41   : > { %p652_p12 = pnand %p651_p6, %p962_p11  ;;  %s656_s30 = scalar_lea.vmem %s655_s29, 2048 }
  0x42   : > { %p657_p8 = scmp.lt.s32.totalorder %s901_s17, %s655_s29  ;;  %p658_p10 = scmp.lt.s32.totalorder %s656_s30, %s650_s27 }
  0x43   : > { %p653_p13 = pneg %p652_p12 }
  0x44   : > { %p659_p0 = por %p658_p10, %p657_p8 }
  0x46   : > { %p660_p2 = pnand %p659_p0, %p653_p13 }
  0xc8   : > { %v199_v18 = vpop.xlane.xlu0 %198 }
  0xc9   : > { %v205_v21 = vpop.xlane.xlu1 %204  ;;  %v209_v23 = vmul.f32 0.00390625, %v199_v18 }
  0xca   : > { %v211_v26 = vmul.f32 0.00390625, %v205_v21 }
  0xcb   : > { %v223_v32 = vrot.slane %v209_v23, %v222_v22 }
  0xcc   : > { %v202_v27 = vpop.xlane.xlu0 %201  ;;  %v235_v34 = vrot.slane %v211_v26, %v234_v25 }
  0xcd   : > { %v210_v29 = vmul.f32 0.00390625, %v202_v27  ;;  %v208_v30 = vpop.xlane.xlu1 %207 }
  0xce   : > { %v212_v31 = vmul.f32 0.00390625, %v208_v30 }
  0xcf   : > { %v228_v33 = vrot.slane %v210_v29, %v227_v24 }
  0xd0   : > { %v242_v35 = vrot.slane %v212_v31, %v241_v28 }
  0xd1   : > { %v230_v36 = vsel %vm229_vm2, %v228_v33, %v223_v32 }
  0xd2   : > { %v237_v37 = vsel %vm236_vm3, %v235_v34, %v230_v36 }
  0xd3   : > { %v244_v38 = vsel %vm243_vm4, %v242_v35, %v237_v37 }
  0xd4   : > { %557 = vmatmul.mubr.msk.f32.vlgmr.msra.gmra.mrb[0].mxu0 %vm245_vm0, %v244_v38 }
 0x1a7   : > { %v317_v40 = vpop.f32.mrb[0].mxu0 }
 0x1a8   : > { %v321_v41 = vmax.f32 %v317_v40, 0.0  ;;  %v558_v42 = vpop.f32.mrb[1].mxu0 }
 0x1aa   : > { %562 = vmatmul.mubr.msk.f32.vlgmr.msra.gmra.mrb[0].mxu1 %vm323_vm6, %v321_v41 }
 0x27d   : > { %v397_v43 = vpop.f32.mrb[0].mxu1 }
 0x27e   : > { %v542_v44 = vmul.f32 -1.442695, %v397_v43  ;;  %v563_v45 = vpop.f32.mrb[1].mxu1 }
 0x280   : > { %616 = vpow2.f32 %v542_v44 }
 0x28a   : > { %v617_v46 = vpop.eup %616 }
 0x28b   : > { %v404_v47 = vadd.f32 1.0, %v617_v46 }
 0x28d   : > { %618 = vrcp.f32 %v404_v47 }
 0x297   : > { %v619_v49 = vpop.eup %618 }
 0x298   : > { %v410_v50 = vrot.slane %v619_v49, %v409_v48 }
 0x29a   : > { %416 = vbcast.lane.b32.xlu1 %v410_v50, 264  ;;  %412 = vbcast.lane.b32.xlu0 %v410_v50, 256 }
 0x29e   : > { %420 = vbcast.lane.b32.xlu1 %v410_v50, 272 }
 0x2a2   : > { %424 = vbcast.lane.b32.xlu1 %v410_v50, 280 }
 0x30c   : > { %v417_v51 = vpop.permute.xlu1 %416  ;;  %v413_v52 = vpop.permute.xlu0 %412 }
 0x30d   : > { %v428_v53 = vmul.f32 %v417_v51, %v870_v5  ;;  %v429_v54 = vmul.f32 %v417_v51, %v872_v6  ;;  %v426_v55 = vmul.f32 %v413_v52, %v860_v0  ;;  %v427_v56 = vmul.f32 %v413_v52, %v862_v1 }
 0x30f   : > { %436 = vst [vmem:[%s188_s8 + $0x10] sm:$0xff] %v428_v53  ;;  %437 = vst [vmem:[%s188_s8 + $0x18] sm:$0xff] %v429_v54 }
 0x310   : > { %434 = vst [vmem:[%s188_s8] sm:$0xff] %v426_v55  ;;  %435 = vst [vmem:[%s188_s8 + $0x8] sm:$0xff] %v427_v56  ;;  %v421_v57 = vpop.permute.xlu1 %420 }
 0x311   : > { %v430_v58 = vmul.f32 %v421_v57, %v864_v2  ;;  %v431_v59 = vmul.f32 %v421_v57, %v868_v4 }
 0x313   : > { %438 = vst [vmem:[%s188_s8 + $0x20] sm:$0xff] %v430_v58  ;;  %439 = vst [vmem:[%s188_s8 + $0x28] sm:$0xff] %v431_v59 }
 0x314   : > { %v425_v60 = vpop.permute.xlu1 %424 }
 0x315   : > { %v432_v61 = vmul.f32 %v425_v60, %v876_v8  ;;  %v433_v62 = vmul.f32 %v425_v60, %v878_v9 }
 0x317   : > { %440 = vst [vmem:[%s188_s8 + $0x30] sm:$0xff] %v432_v61  ;;  %441 = vst [vmem:[%s188_s8 + $0x38] sm:$0xff] %v433_v62 }
 0x318   : > { %663 = shalt.err (!%p660_p2)
}
 0x319   : > { %s664_s9 = scalar_lea.hbm %s906_s26, 1024  ;;  %s668_s23 = scalar_lea.hbm %s955_s3, 2048 }
 0x31a   : > { %p665_p4 = scmp.ne.s32.totalorder %s906_s26, %s664_s9  ;;  %p669_p9 = scmp.lt.u32.totalorder %s906_s26, %s955_s3 }
 0x31b   : > { %p670_p1 = scmp.lt.u32.totalorder %s668_s23, %s664_s9  ;;  %p672_p6 = scmp.lt.u32.totalorder %s664_s9, %s906_s26 }
 0x31c   : > { %p666_p5 = pnand %p665_p4, %p962_p11 }
 0x31d   : > { %p671_p3 = por %p670_p1, %p669_p9 }
 0x31e   : > { %p667_p7 = pneg %p666_p5 }
 0x31f   : > { %p673_p12 = por %p672_p6, %p671_p3 }
 0x321   : > { %p674_p13 = pnand %p673_p12, %p667_p7 }
 0x323   : > { %677 = shalt.err (!%p674_p13)
}
 0x324   : > { %s724_s7 = smov 256   ;;  %s725_s8 = smov 16  }
 0x325   : > { %566 = dma.vmem_to_hbm [thread:$0]  (%p962_p11), %s901_s17, 1024, %s906_s26, %s443_s16, %s724_s7, %s724_s7, %s725_s8  }
 0x326 PF: > { %s471_s19 = sand.u32 1, %s704_s12   ;;  %p963_p8 = scmp.ne.s32.totalorder %s960_s25, 0 }
 0x327   : > { %p964_p10 = scmp.ge.s32.totalorder %s716_s15, 2  ;;  %s472_s20 = scalar_lea.sflag [#allocation4], %s471_s19 }
 0x329   : > { %p573_p0 = pnand %p964_p10, %p963_p8 }
 0x32b   : > { %699 = dma.done.wait (!%p573_p0), %s472_s20, 1024  }
 0x32c   : > { %701 = vsyncadd (!%p573_p0), %s472_s20, 4294966272  ;;  %p16_p2 = scmp.ge.s32.totalorder %s771_s18, 4   ;;  %s965_s12 = smov %s708_s13 }
 0x32d   : > { %s966_s13 = smov %s712_s14  ;;  %s967_s14 = smov %s783_s21 }
 0x32e   : > { %s968_s15 = smov %s771_s18  ;;  %18 = sbr.rel (!%p16_p2) target bundleno = 5 (0x5), region = 77 }
 0x335   :  { %477 = vsyncpa [#allocation3], 1 }
 0x336   :  { %479 = vsyncpa [#allocation3 + $0x1], 1 }
 0x337   :  { %480 = vsyncpa [#allocation4], 1 }
 0x338   :  { %482 = vsyncpa [#allocation4 + $0x1], 1 }

</bundles_post_ra>
